<compile_context>
chip_gen: v6e
topology: v6e:2x2x1
jax: 0.10.0
libtpu: 0.0.40
codegen_flags: <defaults>
</compile_context>

<pallas_src>
import functools

import jax
import jax.numpy as jnp
import numpy as np
from jax.experimental import pallas as pl
from jax.experimental.pallas import tpu as pltpu


def _matern_body(scale_ref, length_ref, x1_ref, x2t_ref, o_ref, r_sc, *extra, nu):
    """One grid step (i, j, k): Matern tile for scale/lengthscale index k.

    scale_ref, length_ref : SMEM (Kdim,) float32
    x1_ref                : VMEM (tm, D)  float32   (points x features)
    x2t_ref               : VMEM (D, tn)  float32   (features x points)
    o_ref                 : VMEM (1, tm, tn) float32
    r_sc                  : VMEM (tm, tn) float32   cached sqrt(nu * sdist)
    extra                 : (sdist scratch,) only when nu == 5
    """
    k = pl.program_id(2)

    # Distance work is k-invariant: compute it only on the first k step of
    # each spatial tile and cache it in VMEM scratch.
    @pl.when(k == 0)
    def _():
        x1 = x1_ref[...]                                       # (tm, D)
        x2t = x2t_ref[...]                                     # (D, tn)
        n1 = jnp.sum(x1 * x1, axis=1, keepdims=True)           # (tm, 1)
        n2 = jnp.sum(x2t * x2t, axis=0, keepdims=True)         # (1, tn)
        cross = jnp.dot(x1, x2t, preferred_element_type=jnp.float32)  # MXU
        # Clamp: FP cancellation for nearby points can give tiny negatives.
        sdist = jnp.maximum(n1 + n2 - 2.0 * cross, 0.0)        # (tm, tn)
        r_sc[...] = jnp.sqrt(sdist * float(nu))
        if nu == 5:
            extra[0][...] = sdist

    # Per-k scalars (exact, computed once per grid step — not per element).
    s = scale_ref[k]
    l = length_ref[k]
    s2 = s * s
    inv_l2 = 1.0 / (l * l)

    r = r_sc[...]
    t = r * inv_l2
    expd = jnp.exp(-t)

    if nu == 1:
        out = s2 * expd
    elif nu == 3:
        out = s2 * ((1.0 + t) * expd)
    elif nu == 5:
        c5 = (float(nu) / 3.0) * inv_l2 * inv_l2
        out = s2 * ((1.0 + t + extra[0][...] * c5) * expd)
    else:
        raise ValueError("nu must be 1, 3 or 5")

    o_ref[...] = out[None].astype(o_ref.dtype)


def matern_pallas(scale, lengthscale, locations1, locations2, *, nu,
                  tm_pref=512, tn_pref=2048):
    """Pallas implementation of MaternKernel.forward.

    scale, lengthscale : (Kdim,) float32
    locations1         : (M, D)  float32
    locations2         : (N, D)  float32
    returns            : (Kdim, M, N) float32
    """
    if nu not in (1, 3, 5):
        raise ValueError("nu must be 1, 3 or 5")

    Kdim = scale.shape[0]
    M, D = locations1.shape
    N = locations2.shape[0]

    # Tile sizes: full extent for small dims (always legal), otherwise a
    # lane/sublane-aligned tile sized for ~16 MiB of VMEM including
    # double-buffered output blocks (safe under the 32 MiB default scoped
    # limit on v7x).
    tm = M if M <= tm_pref else tm_pref        # tm_pref is a multiple of 8
    tn = N if N <= tn_pref else tn_pref        # tn_pref is a multiple of 128

    x2t = locations2.T  # present x2 as (D, N) so N is the lane axis

    scratch_shapes = [pltpu.VMEM((tm, tn), jnp.float32)]       # r = sqrt(nu*sdist)
    if nu == 5:
        scratch_shapes.append(pltpu.VMEM((tm, tn), jnp.float32))  # sdist

    kern = functools.partial(_matern_body, nu=nu)

    grid = (pl.cdiv(M, tm), pl.cdiv(N, tn), Kdim)

    return pl.pallas_call(
        kern,
        out_shape=jax.ShapeDtypeStruct((Kdim, M, N), jnp.float32),
        grid_spec=pltpu.PrefetchScalarGridSpec(
            num_scalar_prefetch=0,
            grid=grid,
            in_specs=[
                pl.BlockSpec(memory_space=pltpu.MemorySpace.SMEM),   # scale
                pl.BlockSpec(memory_space=pltpu.MemorySpace.SMEM),   # lengthscale
                pl.BlockSpec((tm, D), lambda i, j, k: (i, 0)),       # locations1
                pl.BlockSpec((D, tn), lambda i, j, k: (0, j)),       # locations2^T
            ],
            out_specs=pl.BlockSpec((1, tm, tn), lambda i, j, k: (k, i, j)),
            scratch_shapes=scratch_shapes,
        ),
        compiler_params=pltpu.CompilerParams(
            dimension_semantics=("parallel", "parallel", "arbitrary"),
        ),
    )(scale, lengthscale, locations1, x2t)


def matern_ref(scale, lengthscale, locations1, locations2, nu):
    """Pure-JAX reference mirroring the PyTorch forward."""
    diff = locations1[:, None, :] - locations2[None, :, :]
    sdist = jnp.sum(diff * diff, axis=-1)[None]          # (1, M, N)
    s2 = (scale ** 2)[:, None, None]
    l2 = (lengthscale ** 2)[:, None, None]
    r = jnp.sqrt(sdist * nu)
    expd = jnp.exp(-r / l2)
    if nu == 1:
        cons = 1.0
    elif nu == 3:
        cons = 1.0 + r / l2
    elif nu == 5:
        cons = 1.0 + r / l2 + sdist * nu / (3.0 * l2 ** 2)
    else:
        raise ValueError("nu must be 1, 3 or 5")
    return s2 * cons * expd


if __name__ == "__main__":
    key = jax.random.PRNGKey(0)
    k1, k2, k3, k4 = jax.random.split(key, 4)

    Kdim, M, N, D = 4, 16, 8, 3
    nu = 5

    # Deterministic synthetic "parameters" (module __init__ takes scale /
    # lengthscale tensors of shape (Kdim,)) and inducing / query locations.
    locations1 = jax.random.normal(k1, (M, D), dtype=jnp.float32)
    locations2 = jax.random.normal(k2, (N, D), dtype=jnp.float32)
    scale = 0.5 + jax.random.uniform(k3, (Kdim,), dtype=jnp.float32)
    lengthscale = 0.5 + jax.random.uniform(k4, (Kdim,), dtype=jnp.float32)

    out = matern_pallas(scale, lengthscale, locations1, locations2, nu=nu)
    out = jax.block_until_ready(out)

    ref = matern_ref(scale, lengthscale, locations1, locations2, nu)
    assert out.shape == (Kdim, M, N)
    np.testing.assert_allclose(np.asarray(out), np.asarray(ref),
                               rtol=2e-5, atol=2e-5)

    # Also exercise the other nu branches once (cheap, same shapes).
    for nu_chk in (1, 3):
        o = jax.block_until_ready(
            matern_pallas(scale, lengthscale, locations1, locations2, nu=nu_chk))
        r = matern_ref(scale, lengthscale, locations1, locations2, nu_chk)
        np.testing.assert_allclose(np.asarray(o), np.asarray(r),
                                   rtol=2e-5, atol=2e-5)

    # TODO(synk): Kernel.posteriors uses torch.linalg.inv; matrix inversion has
    # no clean Pallas primitive and is left to plain JAX if ever needed.
    print("KERNEL_OK")
</pallas_src>

<mosaic_0001>
module attributes {stable_mosaic.version = 11 : i64} {
  func.func @_matern_body(%arg0: i32, %arg1: i32, %arg2: i32, %arg3: memref<4xf32, #tpu.memory_space<smem>>, %arg4: memref<4xf32, #tpu.memory_space<smem>>, %arg5: memref<16x3xf32, #tpu.memory_space<vmem>>, %arg6: memref<3x8xf32, #tpu.memory_space<vmem>>, %arg7: memref<1x16x8xf32, #tpu.memory_space<vmem>>, %arg8: memref<16x8xf32, #tpu.memory_space<vmem>>, %arg9: memref<16x8xf32, #tpu.memory_space<vmem>>) attributes {dimension_semantics = [#tpu.dimension_semantics<parallel>, #tpu.dimension_semantics<parallel>, #tpu.dimension_semantics<arbitrary>], iteration_bounds = array<i64: 1, 1, 4>, scalar_prefetch = 0 : i64, scratch_operands = 2 : i64, tpu.core_type = #tpu.core_type<tc>, window_params = [{transform_indices = @transform_0, window_bounds = array<i64: 4>}, {transform_indices = @transform_1, window_bounds = array<i64: 4>}, {transform_indices = @transform_2, window_bounds = array<i64: 16, 3>}, {transform_indices = @transform_3, window_bounds = array<i64: 3, 8>}, {transform_indices = @transform_4, window_bounds = array<i64: 1, 16, 8>}]} {
    %c0_i32 = arith.constant 0 : i32
    %0 = arith.cmpi eq, %arg2, %c0_i32 : i32
    %1 = arith.extui %0 : i1 to i32
    %c0_i32_0 = arith.constant 0 : i32
    %2 = arith.cmpi ne, %1, %c0_i32_0 : i32
    scf.if %2 {
      %c0_10 = arith.constant 0 : index
      %c0_11 = arith.constant 0 : index
      %29 = vector.load %arg5[%c0_10, %c0_11] : memref<16x3xf32, #tpu.memory_space<vmem>>, vector<16x3xf32>
      %c0_12 = arith.constant 0 : index
      %c0_13 = arith.constant 0 : index
      %30 = vector.load %arg6[%c0_12, %c0_13] : memref<3x8xf32, #tpu.memory_space<vmem>>, vector<3x8xf32>
      %31 = arith.mulf %29, %29 : vector<16x3xf32>
      %cst_14 = arith.constant dense<0.000000e+00> : vector<16xf32>
      %32 = vector.multi_reduction <add>, %31, %cst_14 [1] : vector<16x3xf32> to vector<16xf32>
      %33 = vector.shape_cast %32 : vector<16xf32> to vector<16x1xf32>
      %34 = arith.mulf %30, %30 : vector<3x8xf32>
      %cst_15 = arith.constant dense<0.000000e+00> : vector<8xf32>
      %35 = vector.multi_reduction <add>, %34, %cst_15 [0] : vector<3x8xf32> to vector<8xf32>
      %36 = vector.shape_cast %35 : vector<8xf32> to vector<1x8xf32>
      %cst_16 = arith.constant dense<0.000000e+00> : vector<16x8xf32>
      %37 = tpu.matmul %29, %30, %cst_16 {dimension_numbers = #tpu.dot_dimension_numbers<[1], [0], [0], [1], [0, 0, 1, 1], [], []>} : vector<16x3xf32>, vector<3x8xf32>, vector<16x8xf32> -> vector<16x8xf32>
      %38 = vector.broadcast %33 : vector<16x1xf32> to vector<16x8xf32>
      %39 = vector.broadcast %36 : vector<1x8xf32> to vector<16x8xf32>
      %40 = arith.addf %38, %39 : vector<16x8xf32>
      %cst_17 = arith.constant 2.000000e+00 : f32
      %41 = vector.broadcast %cst_17 : f32 to vector<16x8xf32>
      %42 = arith.mulf %41, %37 : vector<16x8xf32>
      %43 = arith.subf %40, %42 : vector<16x8xf32>
      %cst_18 = arith.constant 0.000000e+00 : f32
      %44 = vector.broadcast %cst_18 : f32 to vector<16x8xf32>
      %45 = arith.maximumf %43, %44 : vector<16x8xf32>
      %cst_19 = arith.constant 5.000000e+00 : f32
      %46 = vector.broadcast %cst_19 : f32 to vector<16x8xf32>
      %47 = arith.mulf %45, %46 : vector<16x8xf32>
      %48 = math.sqrt %47 : vector<16x8xf32>
      %c0_20 = arith.constant 0 : index
      %c0_21 = arith.constant 0 : index
      %49 = vector.load %arg8[%c0_20, %c0_21] : memref<16x8xf32, #tpu.memory_space<vmem>>, vector<16x8xf32>
      tpu.vector_store %arg8[%c0_20, %c0_21], %48 {strides = array<i32>} : memref<16x8xf32, #tpu.memory_space<vmem>>, vector<16x8xf32>,
      %c0_22 = arith.constant 0 : index
      %c0_23 = arith.constant 0 : index
      %50 = vector.load %arg9[%c0_22, %c0_23] : memref<16x8xf32, #tpu.memory_space<vmem>>, vector<16x8xf32>
      tpu.vector_store %arg9[%c0_22, %c0_23], %45 {strides = array<i32>} : memref<16x8xf32, #tpu.memory_space<vmem>>, vector<16x8xf32>,
    } else {
    }
    %3 = arith.index_cast %arg2 : i32 to index
    %4 = memref.load %arg3[%3] : memref<4xf32, #tpu.memory_space<smem>>
    %5 = arith.index_cast %arg2 : i32 to index
    %6 = memref.load %arg4[%5] : memref<4xf32, #tpu.memory_space<smem>>
    %7 = arith.mulf %4, %4 : f32
    %8 = arith.mulf %6, %6 : f32
    %cst = arith.constant 1.000000e+00 : f32
    %9 = arith.divf %cst, %8 : f32
    %c0 = arith.constant 0 : index
    %c0_1 = arith.constant 0 : index
    %10 = vector.load %arg8[%c0, %c0_1] : memref<16x8xf32, #tpu.memory_space<vmem>>, vector<16x8xf32>
    %11 = vector.broadcast %9 : f32 to vector<16x8xf32>
    %12 = arith.mulf %10, %11 : vector<16x8xf32>
    %cst_2 = arith.constant 0.000000e+00 : f32
    %13 = vector.broadcast %cst_2 : f32 to vector<16x8xf32>
    %14 = arith.subf %13, %12 : vector<16x8xf32>
    %15 = math.exp %14 : vector<16x8xf32>
    %cst_3 = arith.constant 1.66666663 : f32
    %16 = arith.mulf %cst_3, %9 : f32
    %17 = arith.mulf %16, %9 : f32
    %cst_4 = arith.constant 1.000000e+00 : f32
    %18 = vector.broadcast %cst_4 : f32 to vector<16x8xf32>
    %19 = arith.addf %18, %12 : vector<16x8xf32>
    %c0_5 = arith.constant 0 : index
    %c0_6 = arith.constant 0 : index
    %20 = vector.load %arg9[%c0_5, %c0_6] : memref<16x8xf32, #tpu.memory_space<vmem>>, vector<16x8xf32>
    %21 = vector.broadcast %17 : f32 to vector<16x8xf32>
    %22 = arith.mulf %20, %21 : vector<16x8xf32>
    %23 = arith.addf %19, %22 : vector<16x8xf32>
    %24 = arith.mulf %23, %15 : vector<16x8xf32>
    %25 = vector.broadcast %7 : f32 to vector<16x8xf32>
    %26 = arith.mulf %25, %24 : vector<16x8xf32>
    %27 = vector.shape_cast %26 : vector<16x8xf32> to vector<1x16x8xf32>
    %c0_7 = arith.constant 0 : index
    %c0_8 = arith.constant 0 : index
    %c0_9 = arith.constant 0 : index
    %28 = vector.load %arg7[%c0_7, %c0_8, %c0_9] : memref<1x16x8xf32, #tpu.memory_space<vmem>>, vector<1x16x8xf32>
    tpu.vector_store %arg7[%c0_7, %c0_8, %c0_9], %27 {strides = array<i32>} : memref<1x16x8xf32, #tpu.memory_space<vmem>>, vector<1x16x8xf32>,
    return
  }
  func.func @transform_0(%arg0: i32, %arg1: i32, %arg2: i32) -> i32 {
    %c0_i32 = arith.constant 0 : i32
    %c0_i32_0 = arith.constant 0 : i32
    return %c0_i32 : i32
  }
  func.func @transform_1(%arg0: i32, %arg1: i32, %arg2: i32) -> i32 {
    %c0_i32 = arith.constant 0 : i32
    %c0_i32_0 = arith.constant 0 : i32
    return %c0_i32 : i32
  }
  func.func @transform_2(%arg0: i32, %arg1: i32, %arg2: i32) -> (i32, i32) {
    %c0_i32 = arith.constant 0 : i32
    %c0_i32_0 = arith.constant 0 : i32
    return %arg0, %c0_i32 : i32, i32
  }
  func.func @transform_3(%arg0: i32, %arg1: i32, %arg2: i32) -> (i32, i32) {
    %c0_i32 = arith.constant 0 : i32
    %c0_i32_0 = arith.constant 0 : i32
    return %c0_i32, %arg1 : i32, i32
  }
  func.func @transform_4(%arg0: i32, %arg1: i32, %arg2: i32) -> (i32, i32, i32) {
    %c0_i32 = arith.constant 0 : i32
    return %arg2, %arg0, %arg1 : i32, i32, i32
  }
}

</mosaic_0001>

<bundles_post_ra>
// kernel: tpu_custom_call.1
= control target key start
LH: loop header
LB: loop body
LE: loop exit
PB: predicated region body
PF: predicated region fallthrough
CT: control target
= control target key end

     0   :  { %9 = vsyncpa [#allocation5], 0  ;;  %s858_s0 = inlined_call_operand.vmem [shape: f32[4], index: 0, kind: input, shape index: {}]   ;;  %s859_s1 = inlined_call_operand.vmem [shape: f32[4], index: 1, kind: input, shape index: {}]   ;;  %s860_s2 = inlined_call_operand.vmem [shape: f32[16,3], index: 2, kind: input, shape index: {}]   ;;  %s861_s3 = inlined_call_operand.vmem [shape: f32[3,8], index: 3, kind: input, shape index: {}]   ;;  %s862_s4 = inlined_call_operand.vmem [shape: f32[4,16,8], index: 4, kind: output, shape index: {}]  }
   0x1   :  { %10 = vsyncpa [#allocation7], 0  ;;  %s765_s15 = smov 0   ;;  %s767_s16 = smov 0  }
   0x2   :  { %s769_s17 = smov 0  }
   0x3 LB: > { %s592_s18 = sadd.s32 4294967295, %s736_s17   ;;  %s28_s19 = sadd.s32 1, %s732_s16  ;;  %s736_s17 = sphi %s769_s17, %s16_s17   ;;  %s732_s16 = sphi %s767_s16, %s872_s16   ;;  %s728_s15 = sphi %s765_s15, %s871_s15  }
   0x4   : > { %p29_p0 = scmp.ge.s32.totalorder %s28_s19, 4  ;;  %p594_p1 = scmp.ge.s32.totalorder %s736_s17, 1 }
   0x5   : > { %p164_p2 = scmp.lt.s32.totalorder %s736_s17, 5  ;;  %p790_p4 = scmp.eq.s32.totalorder %s592_s18, 0 }
   0x6   : > { %s874_s19 = smov (%p29_p0, %s28_s19), 0  ;;  %s177_s24 = sshll.u32 %s858_s0, 4  ;;  %s178_s24 = int_to_ptr.vmem [resolvable:$true] %s177_s24 }
   0x7   : > { %p786_p3 = pnand %p594_p1, %p164_p2  ;;  %s188_s27 = sshll.u32 %s859_s1, 4  ;;  %s189_s27 = int_to_ptr.vmem [resolvable:$true] %s188_s27 }
   0x8   : > { %s867_s21 = scalar_select %p790_p4, 1, 0 }
   0x9   : > { %s866_s20 = scalar_select %p786_p3, 1, 0 }
   0xa   : > { %p629_p5 = pneg %p786_p3  ;;  %s676_s29 = scalar_lea.vmem %s178_s24, 16 }
   0xb   : > { %p677_p7 = scmp.ne.s32.totalorder %s178_s24, %s676_s29  ;;  %p684_p11 = scmp.lt.s32.totalorder %s178_s24, %s178_s24 }
   0xc   : > { %p804_p6 = pnand %p790_p4, %p629_p5  ;;  %p685_p12 = scmp.lt.s32.totalorder %s676_s29, %s676_s29 }
   0xe   : > { %p678_p8 = pneg %p804_p6  ;;  %p686_p13 = por %p685_p12, %p684_p11 }
  0x10   : > { %p679_p9 = pnand %p678_p8, %p677_p7 }
  0x12   : > { %p680_p10 = pneg %p679_p9 }
  0x14   : > { %p687_p0 = pnand %p686_p13, %p680_p10 }
  0x16   : > { %690 = shalt.err (!%p687_p0)
}
  0x17   : > { %s738_s30 = smov [#allocation4]   ;;  %s691_s5 = scalar_lea.vmem %s189_s27, 16 }
  0x18   : > { %632 = dma.vmem_to_smem (!%p804_p6), %s178_s24, 16, %s738_s30, [#allocation5]  }
  0x19   : > { %p692_p1 = scmp.ne.s32.totalorder %s189_s27, %s691_s5  ;;  %p699_p4 = scmp.lt.s32.totalorder %s189_s27, %s189_s27 }
  0x1a   : > { %p700_p3 = scmp.lt.s32.totalorder %s691_s5, %s691_s5 }
  0x1b   : > { %p694_p2 = pnand %p692_p1, %p678_p8 }
  0x1c   : > { %p701_p7 = por %p700_p3, %p699_p4 }
  0x1d   : > { %p695_p5 = pneg %p694_p2 }
  0x1f   : > { %p702_p9 = pnand %p701_p7, %p695_p5 }
  0x21   : > { %705 = shalt.err (!%p702_p9)
}
  0x22   : > { %s739_s6 = smov [#allocation6]   ;;  %p869_p10 = scmp.ne.s32.totalorder %s866_s20, 0 }
  0x23   : > { %635 = dma.vmem_to_smem (!%p804_p6), %s189_s27, 16, %s739_s6, [#allocation7]  }
  0x24   : > { %217 = sbr.rel (%p869_p10) target bundleno = 379 (0x17b), region = 36  ;;  %p870_p11 = scmp.ne.s32.totalorder (!%p869_p10), %s867_s21, 0 }
  0x29   : > { %719 = dma.done.wait (%p870_p11), [#allocation5], 16  }
  0x2a   : > { %721 = vsyncadd (%p870_p11), [#allocation5], 4294967280 }
  0x2b   : > { %723 = dma.done.wait (%p870_p11), [#allocation7], 16  }
  0x2c   : > { %725 = vsyncadd (%p870_p11), [#allocation7], 4294967280 }
  0x2d   : > { %227 = sfence }
  0x2e   : > { %p270_p3 = scmp.lt.s32.totalorder %s728_s15, 3  ;;  %p604_p4 = scmp.ne.s32.totalorder %s728_s15, 0 }
  0x30   : > { %s271_s7 = scalar_select %p270_p3, %s728_s15, 3 }
  0x31   : > { %285 = sbr.rel (%p604_p4) target bundleno = 279 (0x117), region = 48 }
  0x32   : > { %s610_s8 = sshll.u32 %s271_s7, 4 }
  0x33   : > { %s829_s11 = scalar_lea.vmem %s862_s4, %s610_s8 }
  0x36   : > { %v288_v0 = vld [vmem:[%s861_s3] sm:$0x7]  ;;  %vm313_vm0 = vcmask 1042432   ;;  %vm291_vm1 = vcmask 23552   ;;  %v287_v3 = vld [vmem:[%s860_s2 + $0x8] sm:$0xff]  ;;  %vm299_vm2 = vcmask 59392  }
  0x37   : > { %v286_v1 = vld [vmem:[%s860_s2] sm:$0xff]  ;;  %614 = vmatprep.subr.msk.mxu0 %vm313_vm0, %v288_v0  ;;  %v290_v4 = vmul.f32 %v287_v3, %v287_v3  ;;  %v298_v7 = vmul.f32 %v288_v0, %v288_v0  ;;  %vm416_vm3 = vcmask 64512  }
  0x38   : > { %v289_v2 = vmul.f32 %v286_v1, %v286_v1  ;;  %616 = vmatprep.mubr.msk.f32.mxu0 %vm291_vm1, %v286_v1  ;;  %615 = vmatpush3.msk.msra.mxu0 %vm313_vm0, %v288_v0 }
  0x39   : > { %617 = vmatmul.mubr.msk.f32.vlgmr.msra.gmra.mxu0 %vm291_vm1, %v287_v3  ;;  %v295_v6 = vsel %vm291_vm1, %v290_v4, 0.0  ;;  %v300_v8 = vsel %vm299_vm2, %v298_v7, 0.0 }
  0x3a   : > { %v292_v5 = vsel %vm291_vm1, %v289_v2, 0.0  ;;  %v301_v9 = vrot.slane %v300_v8, 4 }
  0x3b   : > { %293 = vadd.xlane.f32.xlu0 %v292_v5 }
  0x3c   : > { %v302_v10 = vadd.f32 %v301_v9, %v300_v8 }
  0x3e   : > { %v303_v11 = vrot.slane %v302_v10, 2 }
  0x3f   : > { %296 = vadd.xlane.f32.xlu0 %v295_v6 }
  0x40   : > { %v304_v12 = vadd.f32 %v303_v11, %v302_v10 }
  0x42   : > { %v305_v14 = vrot.slane %v304_v12, 1 }
  0x44   : > { %v306_v16 = vadd.f32 %v305_v14, %v304_v12 }
  0xc4   : > { %v294_v13 = vpop.xlane.xlu0 %293 }
  0xc5   : > { %v392_v21 = vadd.f32 %v306_v16, %v294_v13 }
  0xc8   : > { %v297_v15 = vpop.xlane.xlu0 %296 }
  0xc9   : > { %v393_v17 = vadd.f32 %v306_v16, %v297_v15 }
  0xf9   : > { %v618_v18 = vpop.f32.mrf.mxu0 }
  0xfa   : > { %v395_v19 = vmul.f32 2.0, %v618_v18 }
  0xfb   : > { %v383_v20 = vpop.f32.mrf.mxu0 }
  0xfc   : > { %v397_v22 = vsub.f32 %v393_v17, %v395_v19  ;;  %v394_v23 = vmul.f32 2.0, %v383_v20 }
  0xfe   : > { %v399_v24 = vmax.f32 %v397_v22, 0.0  ;;  %v396_v25 = vsub.f32 %v392_v21, %v394_v23 }
 0x100   : > { %v401_v26 = vmul.f32 5.0, %v399_v24  ;;  %420 = vst.msk [vmem:[#allocation3 + $0x8] sm:$0xff] %vm416_vm3, %v399_v24  ;;  %v398_v27 = vmax.f32 %v396_v25, 0.0 }
 0x102   : > { %666 = vrsqrt.f32 %v401_v26  ;;  %419 = vst.msk [vmem:[#allocation3] sm:$0xff] %vm416_vm3, %v398_v27  ;;  %v400_v28 = vmul.f32 5.0, %v398_v27  ;;  %vm411_vm4 = vcmp.eq.f32.partialorder %v401_v26, inf  ;;  %v414_v31 = vand.u32 2147483648, %v401_v26 }
 0x103   : > { %vm413_vm5 = vcmp.eq.f32.partialorder %v401_v26, 0.0 }
 0x104   : > { %668 = vrsqrt.f32 %v400_v28  ;;  %vm404_vm6 = vcmp.eq.f32.partialorder %v400_v28, inf  ;;  %v407_v36 = vand.u32 2147483648, %v400_v28  ;;  %vm406_vm7 = vcmp.eq.f32.partialorder %v400_v28, 0.0 }
 0x10f   : > { %v667_v29 = vpop.eup %666 }
 0x110   : > { %v410_v30 = vmul.f32 %v667_v29, %v401_v26 }
 0x111   : > { %v669_v32 = vpop.eup %668 }
 0x112   : > { %v412_v33 = vsel %vm411_vm4, %v401_v26, %v410_v30  ;;  %v403_v35 = vmul.f32 %v669_v32, %v400_v28 }
 0x113   : > { %v415_v34 = vsel %vm413_vm5, %v414_v31, %v412_v33 }
 0x114   : > { %418 = vst.msk [vmem:[#allocation2 + $0x8] sm:$0xff] %vm416_vm3, %v415_v34  ;;  %v405_v37 = vsel %vm404_vm6, %v400_v28, %v403_v35 }
 0x115   : > { %v408_v38 = vsel %vm406_vm7, %v407_v36, %v405_v37 }
 0x116   : > { %417 = vst.msk [vmem:[#allocation2] sm:$0xff] %vm416_vm3, %v408_v38 }
 0x117 PF: > { %s422_s22 = sld [smem:[#allocation6 + %s728_s15]]  ;;  %v443_v50 = vld [vmem:[#allocation3] sm:$0xff]  ;;  %v444_v52 = vld [vmem:[#allocation3 + $0x8] sm:$0xff]  ;;  %vm455_vm8 = vcmask 64512  }
 0x118   : > { %s421_s26 = sld [smem:[#allocation4 + %s728_s15]] }
 0x11b   : > { %v429_v42 = vld [vmem:[#allocation2 + $0x8] sm:$0xff] }
 0x11d   : > { %s424_s23 = smul.f32 %s422_s22, %s422_s22  ;;  %v428_v41 = vld [vmem:[#allocation2] sm:$0xff] }
 0x11e   : > { %s423_s28 = smul.f32 %s421_s26, %s421_s26 }
 0x11f   : > { %v425_v39 = vstv %s424_s23 }
 0x120   : > { %670 = vrcp.f32 %v425_v39  ;;  %v452_v60 = vstv %s423_s28 }
 0x12d   : > { %v671_v40 = vpop.eup %670 }
 0x12e   : > { %619 = vpush %v671_v40 }
 0x15f   : > { %s620_s24 = spop %619 }
 0x160   : > { %v430_v43 = vstv %s620_s24  ;;  %s439_s25 = smul.f32 1.6666666, %s620_s24 }
 0x161   : > { %v431_v44 = vmul.f32 %v430_v43, %v428_v41  ;;  %v432_v45 = vmul.f32 %v430_v43, %v429_v42 }
 0x162   : > { %s440_s27 = smul.f32 %s620_s24, %s439_s25 }
 0x163   : > { %v433_v46 = vsub.f32 0.0, %v431_v44  ;;  %v434_v47 = vsub.f32 0.0, %v432_v45  ;;  %v441_v55 = vadd.f32 1.0, %v431_v44  ;;  %v442_v56 = vadd.f32 1.0, %v432_v45 }
 0x164   : > { %v445_v51 = vstv %s440_s27 }
 0x165   : > { %v435_v48 = vmul.f32 1.442695, %v433_v46  ;;  %v437_v49 = vmul.f32 1.442695, %v434_v47  ;;  %v446_v53 = vmul.f32 %v445_v51, %v443_v50  ;;  %v447_v54 = vmul.f32 %v445_v51, %v444_v52 }
 0x167   : > { %672 = vpow2.f32 %v435_v48  ;;  %v448_v57 = vadd.f32 %v446_v53, %v441_v55  ;;  %v449_v59 = vadd.f32 %v447_v54, %v442_v56 }
 0x168   : > { %674 = vpow2.f32 %v437_v49 }
 0x174   : > { %v673_v58 = vpop.eup %672 }
 0x175   : > { %v675_v61 = vpop.eup %674  ;;  %v450_v62 = vmul.f32 %v673_v58, %v448_v57 }
 0x176   : > { %v451_v63 = vmul.f32 %v675_v61, %v449_v59 }
 0x177   : > { %v453_v0 = vmul.f32 %v452_v60, %v450_v62 }
 0x178   : > { %v454_v1 = vmul.f32 %v452_v60, %v451_v63 }
 0x179   : > { %456 = vst.msk [vmem:[%s829_s11] sm:$0xff] %vm455_vm8, %v453_v0 }
 0x17a   : > { %457 = vst.msk [vmem:[%s829_s11 + $0x8] sm:$0xff] %vm455_vm8, %v454_v1 }
 0x17b PF: > { %s16_s17 = sadd.s32 1, %s736_s17   ;;  %s871_s15 = smov %s732_s16 }
 0x17c   : > { %p13_p6 = scmp.ge.s32.totalorder %s16_s17, 6   ;;  %s872_s16 = smov %s874_s19 }
 0x17e   :  { %15 = sbr.rel (!%p13_p6) target bundleno = 3 (0x3), region = 82 }
 0x183   :  { %494 = vsyncpa [#allocation5], 1 }
 0x184   :  { %496 = vsyncpa [#allocation5 + $0x1], 1 }
 0x185   :  { %497 = vsyncpa [#allocation7], 1 }

</bundles_post_ra>
